<compile_context>
chip_gen: v5e
topology: v5e:2x2
jax: 0.10.0
libtpu: 0.0.40
codegen_flags: <defaults>
</compile_context>

<pallas_src>
import jax
import jax.numpy as jnp
from jax.experimental import pallas as pl
from jax.experimental.pallas import tpu as pltpu


def make_encoder_kernel(*, S, H, Do, H2, Dz, TB, TS, dropout_prob):
    """Returns a kernel closed over the static layer sizes / tile sizes."""
    inv_S = 1.0 / float(S)
    use_dropout = dropout_prob > 0.0
    # keep iff 31-bit hash >= thr  =>  P(keep) = 1 - p.
    thr = min(int(round(dropout_prob * (1 << 31))), (1 << 31) - 1)

    def kernel(seed_ref,                 # (1,) int32, scalar-prefetch (SMEM)
               x_ref,                    # (TB, TS, Din)
               eps_ref,                  # (TB, Dz)
               w1_ref,                   # (Din, H)    pre-scaled by 1/(1-p)
               w2_ref,                   # (H, Do)
               wz_ref,                   # (Do, H2)
               wmuls_ref,                # (H2, 2*Dz)  fused mu|logsigma
               bias_ref,                 # (4, W)      packed b1|b2|bz|bmu,bls
               z_ref,                    # (TB, Dz)    output
               acc_ref):                 # (TB, H)     VMEM scratch (set-sum)
        bi = pl.program_id(0)
        si = pl.program_id(1)
        n_si = pl.num_programs(1)

        @pl.when(si == 0)
        def _init():
            acc_ref[...] = jnp.zeros_like(acc_ref)

        bias = bias_ref[...]
        b1 = bias[0:1, :H]               # already scaled by 1/(1-p)

        # ---- emb_encode first Linear (dropout scale folded into w1/b1) -----
        x = x_ref[...].reshape(TB * TS, -1)
        h1 = jnp.dot(x, w1_ref[...], preferred_element_type=jnp.float32) + b1

        if use_dropout:
            # On-chip dropout mask from a pure int32 hash (VPU-only; works on
            # TPU Mosaic and in interpret mode, unlike pltpu.prng_*).
            r = jax.lax.broadcasted_iota(jnp.int32, h1.shape, 0)
            c = jax.lax.broadcasted_iota(jnp.int32, h1.shape, 1)
            h = (seed_ref[0]
                 + bi * jnp.int32(0x01000193)
                 + si * jnp.int32(0x61C88647)
                 + r * jnp.int32(0x5BD1E995)
                 + c * jnp.int32(0x3243F6A9))
            h = h ^ ((h & jnp.int32(0x7FFFFFFF)) >> 15)
            h = h * jnp.int32(0x7FEB352D)
            h = h ^ ((h & jnp.int32(0x7FFFFFFF)) >> 13)
            h = h * jnp.int32(0x3243F6A9)
            h = h ^ ((h & jnp.int32(0x7FFFFFFF)) >> 16)
            bits31 = h & jnp.int32(0x7FFFFFFF)
            keep = bits31 >= jnp.int32(thr)          # integer threshold
            h1 = jnp.where(keep, h1, 0.0)

        h1 = jnp.maximum(h1, 0.0)                     # ReLU

        # ---- aggregate: per-batch partial sums over the set dimension.
        # w2/b2 are NOT applied here: Linear commutes with the mean, so they
        # run once per batch tile in the finalize branch below.
        acc_ref[...] += h1.reshape(TB, TS, H).sum(axis=1)

        # ---- second Linear + z_encode head (once, after last set chunk) ----
        @pl.when(si == n_si - 1)
        def _finalize():
            b2 = bias[1:2, :Do]
            bz = bias[2:3, :H2]
            bmuls = bias[3:4, :2 * Dz]
            hbar = acc_ref[...] * jnp.float32(inv_S)                  # (TB, H)
            zbar = jnp.dot(hbar, w2_ref[...],
                           preferred_element_type=jnp.float32) + b2   # (TB, Do)
            h2 = jnp.maximum(
                jnp.dot(zbar, wz_ref[...],
                        preferred_element_type=jnp.float32) + bz, 0.0)
            muls = jnp.dot(h2, wmuls_ref[...],
                           preferred_element_type=jnp.float32) + bmuls
            mu = muls[:, :Dz]
            log_sigma = muls[:, Dz:]
            std = jnp.exp(0.5 * log_sigma)
            z_ref[...] = eps_ref[...] * std + mu

    return kernel


def _pick_tile(n, max_tile):
    """Tile size satisfying the (8,128) second-minor rule: multiple of 8 that
    divides n, or the full extent if n is not a multiple of 8."""
    if n % 8 != 0:
        return n
    t = max(8, min(n, max_tile))
    t -= t % 8
    while n % t != 0:
        t -= 8
    return t


def init_params(key, input_size, hidden_size, output_size):
    """Deterministic PyTorch-Linear-style init (uniform +/- 1/sqrt(fan_in))."""
    def linear(k, fan_in, fan_out):
        kw, kb = jax.random.split(k)
        bound = 1.0 / jnp.sqrt(fan_in)
        w = jax.random.uniform(kw, (fan_in, fan_out), jnp.float32, -bound, bound)
        b = jax.random.uniform(kb, (1, fan_out), jnp.float32, -bound, bound)
        return w, b

    ks = jax.random.split(key, 5)
    w1, b1 = linear(ks[0], input_size, hidden_size)     # input_to_hidden[0]
    w2, b2 = linear(ks[1], hidden_size, output_size)    # input_to_hidden[3]
    wz, bz = linear(ks[2], input_size, hidden_size)     # z_to_hidden (z1_dim==input_size)
    wmu, bmu = linear(ks[3], hidden_size, output_size)  # hidden_to_mu
    wls, bls = linear(ks[4], hidden_size, output_size)  # hidden_to_logsigma
    return (w1, b1, w2, b2, wz, bz, wmu, bmu, wls, bls)


def neu_process_encoder_forward(x, params, key, dropout_prob=0.4):
    """x: (B, S, D_in) float32 -> z: (B, D_z) float32 (train-mode forward)."""
    B, S, Din = x.shape
    w1, b1, w2, b2, wz, bz, wmu, bmu, wls, bls = params
    H = w1.shape[1]
    Do = w2.shape[1]
    H2 = wz.shape[1]
    Dz = wmu.shape[1]
    assert wz.shape[0] == Do, "module requires output_size == input_size (z1_dim)"
    assert 0.0 <= dropout_prob < 1.0

    # Fold inverted-dropout scale into the first Linear (once, outside kernel).
    inv_keep = 1.0 / (1.0 - dropout_prob) if dropout_prob > 0.0 else 1.0
    w1s = w1 * jnp.float32(inv_keep)
    b1s = b1 * jnp.float32(inv_keep)

    # Fuse hidden_to_mu | hidden_to_logsigma into one matmul.
    wmuls = jnp.concatenate([wmu, wls], axis=1)                       # (H2, 2*Dz)

    # Pack the four bias rows into one (4, W) slab -> single DMA.
    W = max(H, Do, H2, 2 * Dz)
    def _row(b):
        return jnp.pad(b, ((0, 0), (0, W - b.shape[1])))
    bias_slab = jnp.concatenate(
        [_row(b1s), _row(b2), _row(bz),
         _row(jnp.concatenate([bmu, bls], axis=1))], axis=0)          # (4, W)

    k_seed, k_eps = jax.random.split(key)
    # Small range: per-grid-cell offsets cannot overflow int32.
    seed = jax.random.randint(k_seed, (1,), 0, 1 << 30, dtype=jnp.int32)
    eps = jax.random.normal(k_eps, (B, Dz), jnp.float32)

    # Tiling: batch axis "parallel" (megacore), set axis "arbitrary" (reduction,
    # last).  Row budget keeps x + h1/mask temps well inside v7x's 64 MiB VMEM.
    TB = _pick_tile(B, 64)
    if B // TB < 2 and TB % 16 == 0:   # prefer >=2 batch tiles for megacore
        TB //= 2
    ROW_BUDGET = 8192
    TS = _pick_tile(S, max(8, ROW_BUDGET // max(TB, 1)))
    grid = (B // TB, S // TS)

    kernel = make_encoder_kernel(S=S, H=H, Do=Do, H2=H2, Dz=Dz,
                                 TB=TB, TS=TS, dropout_prob=dropout_prob)

    in_specs = [
        pl.BlockSpec((TB, TS, Din),   lambda bi, si, seed_ref: (bi, si, 0)),  # x
        pl.BlockSpec((TB, Dz),        lambda bi, si, seed_ref: (bi, 0)),      # eps
        pl.BlockSpec(w1s.shape,       lambda bi, si, seed_ref: (0, 0)),       # w1 (scaled)
        pl.BlockSpec(w2.shape,        lambda bi, si, seed_ref: (0, 0)),       # w2
        pl.BlockSpec(wz.shape,        lambda bi, si, seed_ref: (0, 0)),       # wz
        pl.BlockSpec(wmuls.shape,     lambda bi, si, seed_ref: (0, 0)),       # wmu|wls
        pl.BlockSpec(bias_slab.shape, lambda bi, si, seed_ref: (0, 0)),       # biases
    ]
    out_spec = pl.BlockSpec((TB, Dz), lambda bi, si, seed_ref: (bi, 0))

    z = pl.pallas_call(
        kernel,
        out_shape=jax.ShapeDtypeStruct((B, Dz), jnp.float32),
        grid_spec=pltpu.PrefetchScalarGridSpec(
            num_scalar_prefetch=1,
            grid=grid,
            in_specs=in_specs,
            out_specs=out_spec,
            scratch_shapes=[pltpu.VMEM((TB, H), jnp.float32)],
        ),
        compiler_params=pltpu.CompilerParams(
            dimension_semantics=("parallel", "arbitrary"),
            vmem_limit_bytes=64 * 1024 * 1024),
    )(seed, x, eps, w1s, w2, wz, wmuls, bias_slab)
    return z


def reference_forward_no_dropout(x, params, key):
    """Pure-JAX reference of the module's forward with dropout disabled."""
    B, S, Din = x.shape
    w1, b1, w2, b2, wz, bz, wmu, bmu, wls, bls = params
    Dz = wmu.shape[1]
    _, k_eps = jax.random.split(key)
    eps = jax.random.normal(k_eps, (B, Dz), jnp.float32)
    h = jnp.maximum(x @ w1 + b1, 0.0)
    z_ = h @ w2 + b2
    zbar = z_.mean(axis=-2)
    h2 = jnp.maximum(zbar @ wz + bz, 0.0)
    mu = h2 @ wmu + bmu
    log_sigma = h2 @ wls + bls
    return eps * jnp.exp(0.5 * log_sigma) + mu


if __name__ == "__main__":
    # input_size == hidden_size == output_size (the module requires
    # output_size == input_size for z_to_hidden to compose).
    B, S, D = 2, 8, 32

    root = jax.random.PRNGKey(0)
    k_param, k_x, k_fwd = jax.random.split(root, 3)

    params = init_params(k_param, input_size=D, hidden_size=D, output_size=D)
    x = jax.random.normal(k_x, (B, S, D), jnp.float32)

    # Deterministic check (dropout disabled) against a pure-JAX reference —
    # validates the "apply w2 after the mean" refactor.
    z0 = neu_process_encoder_forward(x, params, k_fwd, dropout_prob=0.0)
    z0 = jax.block_until_ready(z0)
    z0_ref = reference_forward_no_dropout(x, params, k_fwd)
    assert z0.shape == (B, D)
    assert bool(jnp.allclose(z0, z0_ref, rtol=1e-4, atol=1e-4))

    # Train-mode forward with on-chip dropout.
    z = neu_process_encoder_forward(x, params, k_fwd, dropout_prob=0.4)
    z = jax.block_until_ready(z)

    assert z.shape == (B, D) and z.dtype == jnp.float32
    assert bool(jnp.all(jnp.isfinite(z)))
    print("KERNEL_OK")
</pallas_src>

<mosaic_0001>
module attributes {stable_mosaic.version = 11 : i64} {
  func.func @kernel(%arg0: i32, %arg1: i32, %arg2: memref<1xi32, #tpu.memory_space<smem>>, %arg3: memref<2x8x32xf32, #tpu.memory_space<vmem>>, %arg4: memref<2x32xf32, #tpu.memory_space<vmem>>, %arg5: memref<32x32xf32, #tpu.memory_space<vmem>>, %arg6: memref<32x32xf32, #tpu.memory_space<vmem>>, %arg7: memref<32x32xf32, #tpu.memory_space<vmem>>, %arg8: memref<32x64xf32, #tpu.memory_space<vmem>>, %arg9: memref<4x64xf32, #tpu.memory_space<vmem>>, %arg10: memref<2x32xf32, #tpu.memory_space<vmem>>, %arg11: memref<2x32xf32, #tpu.memory_space<vmem>>) attributes {dimension_semantics = [#tpu.dimension_semantics<parallel>, #tpu.dimension_semantics<arbitrary>], iteration_bounds = array<i64: 1, 1>, scalar_prefetch = 1 : i64, scratch_operands = 1 : i64, tpu.core_type = #tpu.core_type<tc>, window_params = [{transform_indices = @transform_0, window_bounds = array<i64: 2, 8, 32>}, {transform_indices = @transform_1, window_bounds = array<i64: 2, 32>}, {pipeline_mode = #tpu.pipeline_mode<synchronous>, transform_indices = @transform_2, window_bounds = array<i64: 32, 32>}, {pipeline_mode = #tpu.pipeline_mode<synchronous>, transform_indices = @transform_3, window_bounds = array<i64: 32, 32>}, {pipeline_mode = #tpu.pipeline_mode<synchronous>, transform_indices = @transform_4, window_bounds = array<i64: 32, 32>}, {pipeline_mode = #tpu.pipeline_mode<synchronous>, transform_indices = @transform_5, window_bounds = array<i64: 32, 64>}, {pipeline_mode = #tpu.pipeline_mode<synchronous>, transform_indices = @transform_6, window_bounds = array<i64: 4, 64>}, {transform_indices = @transform_7, window_bounds = array<i64: 2, 32>}]} {
    %c0_i32 = arith.constant 0 : i32
    %0 = arith.cmpi eq, %arg1, %c0_i32 : i32
    %1 = arith.extui %0 : i1 to i32
    %c0_i32_0 = arith.constant 0 : i32
    %2 = arith.cmpi ne, %1, %c0_i32_0 : i32
    scf.if %2 {
      %cst_15 = arith.constant 0.000000e+00 : f32
      %21 = vector.broadcast %cst_15 : f32 to vector<2x32xf32>
      %c0_16 = arith.constant 0 : index
      %c0_17 = arith.constant 0 : index
      %22 = vector.load %arg11[%c0_16, %c0_17] : memref<2x32xf32, #tpu.memory_space<vmem>>, vector<2x32xf32>
      tpu.vector_store %arg11[%c0_16, %c0_17], %21 {strides = array<i32>} : memref<2x32xf32, #tpu.memory_space<vmem>>, vector<2x32xf32>,
    } else {
    }
    %c0 = arith.constant 0 : index
    %c0_1 = arith.constant 0 : index
    %3 = vector.load %arg9[%c0, %c0_1] : memref<4x64xf32, #tpu.memory_space<vmem>>, vector<4x64xf32>
    %4 = vector.extract_strided_slice %3 {offsets = [0, 0], sizes = [1, 32], strides = [1, 1]} : vector<4x64xf32> to vector<1x32xf32>
    %c0_2 = arith.constant 0 : index
    %c0_3 = arith.constant 0 : index
    %c0_4 = arith.constant 0 : index
    %5 = vector.load %arg3[%c0_2, %c0_3, %c0_4] : memref<2x8x32xf32, #tpu.memory_space<vmem>>, vector<2x8x32xf32>
    %6 = vector.shape_cast %5 : vector<2x8x32xf32> to vector<16x32xf32>
    %c0_5 = arith.constant 0 : index
    %c0_6 = arith.constant 0 : index
    %7 = vector.load %arg5[%c0_5, %c0_6] : memref<32x32xf32, #tpu.memory_space<vmem>>, vector<32x32xf32>
    %cst = arith.constant dense<0.000000e+00> : vector<16x32xf32>
    %8 = tpu.matmul %6, %7, %cst {dimension_numbers = #tpu.dot_dimension_numbers<[1], [0], [0], [1], [0, 0, 1, 1], [], []>} : vector<16x32xf32>, vector<32x32xf32>, vector<16x32xf32> -> vector<16x32xf32>
    %9 = vector.broadcast %4 : vector<1x32xf32> to vector<16x32xf32>
    %10 = arith.addf %8, %9 : vector<16x32xf32>
    %cst_7 = arith.constant 0.000000e+00 : f32
    %11 = vector.broadcast %cst_7 : f32 to vector<16x32xf32>
    %12 = arith.maximumf %10, %11 : vector<16x32xf32>
    %c0_8 = arith.constant 0 : index
    %c0_9 = arith.constant 0 : index
    %13 = vector.load %arg11[%c0_8, %c0_9] : memref<2x32xf32, #tpu.memory_space<vmem>>, vector<2x32xf32>
    %14 = vector.shape_cast %12 : vector<16x32xf32> to vector<2x8x32xf32>
    %cst_10 = arith.constant dense<0.000000e+00> : vector<2x32xf32>
    %15 = vector.multi_reduction <add>, %14, %cst_10 [1] : vector<2x8x32xf32> to vector<2x32xf32>
    %16 = arith.addf %13, %15 : vector<2x32xf32>
    %c0_11 = arith.constant 0 : index
    %c0_12 = arith.constant 0 : index
    %17 = vector.load %arg11[%c0_11, %c0_12] : memref<2x32xf32, #tpu.memory_space<vmem>>, vector<2x32xf32>
    tpu.vector_store %arg11[%c0_11, %c0_12], %16 {strides = array<i32>} : memref<2x32xf32, #tpu.memory_space<vmem>>, vector<2x32xf32>,
    %c0_i32_13 = arith.constant 0 : i32
    %18 = arith.cmpi eq, %arg1, %c0_i32_13 : i32
    %19 = arith.extui %18 : i1 to i32
    %c0_i32_14 = arith.constant 0 : i32
    %20 = arith.cmpi ne, %19, %c0_i32_14 : i32
    scf.if %20 {
      %21 = vector.extract_strided_slice %3 {offsets = [1, 0], sizes = [1, 32], strides = [1, 1]} : vector<4x64xf32> to vector<1x32xf32>
      %22 = vector.extract_strided_slice %3 {offsets = [2, 0], sizes = [1, 32], strides = [1, 1]} : vector<4x64xf32> to vector<1x32xf32>
      %23 = vector.extract_strided_slice %3 {offsets = [3, 0], sizes = [1, 64], strides = [1, 1]} : vector<4x64xf32> to vector<1x64xf32>
      %c0_15 = arith.constant 0 : index
      %c0_16 = arith.constant 0 : index
      %24 = vector.load %arg11[%c0_15, %c0_16] : memref<2x32xf32, #tpu.memory_space<vmem>>, vector<2x32xf32>
      %cst_17 = arith.constant 1.250000e-01 : f32
      %25 = vector.broadcast %cst_17 : f32 to vector<2x32xf32>
      %26 = arith.mulf %24, %25 : vector<2x32xf32>
      %c0_18 = arith.constant 0 : index
      %c0_19 = arith.constant 0 : index
      %27 = vector.load %arg6[%c0_18, %c0_19] : memref<32x32xf32, #tpu.memory_space<vmem>>, vector<32x32xf32>
      %cst_20 = arith.constant dense<0.000000e+00> : vector<2x32xf32>
      %28 = tpu.matmul %26, %27, %cst_20 {dimension_numbers = #tpu.dot_dimension_numbers<[1], [0], [0], [1], [0, 0, 1, 1], [], []>} : vector<2x32xf32>, vector<32x32xf32>, vector<2x32xf32> -> vector<2x32xf32>
      %29 = vector.broadcast %21 : vector<1x32xf32> to vector<2x32xf32>
      %30 = arith.addf %28, %29 : vector<2x32xf32>
      %c0_21 = arith.constant 0 : index
      %c0_22 = arith.constant 0 : index
      %31 = vector.load %arg7[%c0_21, %c0_22] : memref<32x32xf32, #tpu.memory_space<vmem>>, vector<32x32xf32>
      %cst_23 = arith.constant dense<0.000000e+00> : vector<2x32xf32>
      %32 = tpu.matmul %30, %31, %cst_23 {dimension_numbers = #tpu.dot_dimension_numbers<[1], [0], [0], [1], [0, 0, 1, 1], [], []>} : vector<2x32xf32>, vector<32x32xf32>, vector<2x32xf32> -> vector<2x32xf32>
      %33 = vector.broadcast %22 : vector<1x32xf32> to vector<2x32xf32>
      %34 = arith.addf %32, %33 : vector<2x32xf32>
      %cst_24 = arith.constant 0.000000e+00 : f32
      %35 = vector.broadcast %cst_24 : f32 to vector<2x32xf32>
      %36 = arith.maximumf %34, %35 : vector<2x32xf32>
      %c0_25 = arith.constant 0 : index
      %c0_26 = arith.constant 0 : index
      %37 = vector.load %arg8[%c0_25, %c0_26] : memref<32x64xf32, #tpu.memory_space<vmem>>, vector<32x64xf32>
      %cst_27 = arith.constant dense<0.000000e+00> : vector<2x64xf32>
      %38 = tpu.matmul %36, %37, %cst_27 {dimension_numbers = #tpu.dot_dimension_numbers<[1], [0], [0], [1], [0, 0, 1, 1], [], []>} : vector<2x32xf32>, vector<32x64xf32>, vector<2x64xf32> -> vector<2x64xf32>
      %39 = vector.broadcast %23 : vector<1x64xf32> to vector<2x64xf32>
      %40 = arith.addf %38, %39 : vector<2x64xf32>
      %41 = vector.extract_strided_slice %40 {offsets = [0, 0], sizes = [2, 32], strides = [1, 1]} : vector<2x64xf32> to vector<2x32xf32>
      %42 = vector.extract_strided_slice %40 {offsets = [0, 32], sizes = [2, 32], strides = [1, 1]} : vector<2x64xf32> to vector<2x32xf32>
      %cst_28 = arith.constant 5.000000e-01 : f32
      %43 = vector.broadcast %cst_28 : f32 to vector<2x32xf32>
      %44 = arith.mulf %43, %42 : vector<2x32xf32>
      %45 = math.exp %44 : vector<2x32xf32>
      %c0_29 = arith.constant 0 : index
      %c0_30 = arith.constant 0 : index
      %46 = vector.load %arg4[%c0_29, %c0_30] : memref<2x32xf32, #tpu.memory_space<vmem>>, vector<2x32xf32>
      %47 = arith.mulf %46, %45 : vector<2x32xf32>
      %48 = arith.addf %47, %41 : vector<2x32xf32>
      %c0_31 = arith.constant 0 : index
      %c0_32 = arith.constant 0 : index
      %49 = vector.load %arg10[%c0_31, %c0_32] : memref<2x32xf32, #tpu.memory_space<vmem>>, vector<2x32xf32>
      tpu.vector_store %arg10[%c0_31, %c0_32], %48 {strides = array<i32>} : memref<2x32xf32, #tpu.memory_space<vmem>>, vector<2x32xf32>,
    } else {
    }
    return
  }
  func.func @transform_0(%arg0: i32, %arg1: i32, %arg2: memref<1xi32, #tpu.memory_space<smem>>) -> (i32, i32, i32) {
    %c0_i32 = arith.constant 0 : i32
    %c0_i32_0 = arith.constant 0 : i32
    return %arg0, %arg1, %c0_i32 : i32, i32, i32
  }
  func.func @transform_1(%arg0: i32, %arg1: i32, %arg2: memref<1xi32, #tpu.memory_space<smem>>) -> (i32, i32) {
    %c0_i32 = arith.constant 0 : i32
    %c0_i32_0 = arith.constant 0 : i32
    return %arg0, %c0_i32 : i32, i32
  }
  func.func @transform_2(%arg0: i32, %arg1: i32, %arg2: memref<1xi32, #tpu.memory_space<smem>>) -> (i32, i32) {
    %c0_i32 = arith.constant 0 : i32
    %c0_i32_0 = arith.constant 0 : i32
    %c0_i32_1 = arith.constant 0 : i32
    return %c0_i32, %c0_i32_0 : i32, i32
  }
  func.func @transform_3(%arg0: i32, %arg1: i32, %arg2: memref<1xi32, #tpu.memory_space<smem>>) -> (i32, i32) {
    %c0_i32 = arith.constant 0 : i32
    %c0_i32_0 = arith.constant 0 : i32
    %c0_i32_1 = arith.constant 0 : i32
    return %c0_i32, %c0_i32_0 : i32, i32
  }
  func.func @transform_4(%arg0: i32, %arg1: i32, %arg2: memref<1xi32, #tpu.memory_space<smem>>) -> (i32, i32) {
    %c0_i32 = arith.constant 0 : i32
    %c0_i32_0 = arith.constant 0 : i32
    %c0_i32_1 = arith.constant 0 : i32
    return %c0_i32, %c0_i32_0 : i32, i32
  }
  func.func @transform_5(%arg0: i32, %arg1: i32, %arg2: memref<1xi32, #tpu.memory_space<smem>>) -> (i32, i32) {
    %c0_i32 = arith.constant 0 : i32
    %c0_i32_0 = arith.constant 0 : i32
    %c0_i32_1 = arith.constant 0 : i32
    return %c0_i32, %c0_i32_0 : i32, i32
  }
  func.func @transform_6(%arg0: i32, %arg1: i32, %arg2: memref<1xi32, #tpu.memory_space<smem>>) -> (i32, i32) {
    %c0_i32 = arith.constant 0 : i32
    %c0_i32_0 = arith.constant 0 : i32
    %c0_i32_1 = arith.constant 0 : i32
    return %c0_i32, %c0_i32_0 : i32, i32
  }
  func.func @transform_7(%arg0: i32, %arg1: i32, %arg2: memref<1xi32, #tpu.memory_space<smem>>) -> (i32, i32) {
    %c0_i32 = arith.constant 0 : i32
    %c0_i32_0 = arith.constant 0 : i32
    return %arg0, %c0_i32 : i32, i32
  }
}

</mosaic_0001>

<bundles_post_ra>
// kernel: tpu_custom_call.1
= control target key start
LH: loop header
LB: loop body
LE: loop exit
PB: predicated region body
PF: predicated region fallthrough
CT: control target
= control target key end

     0   :  { %14 = vsyncpa [#allocation6], 0  ;;  %s560_s0 = inlined_call_operand.<no memory space> [shape: s32[1], index: 0, kind: input, shape index: {}]   ;;  %s561_s1 = inlined_call_operand.hbm [shape: f32[2,8,32], index: 1, kind: input, shape index: {}]   ;;  %s562_s2 = inlined_call_operand.vmem [shape: f32[2,32], index: 2, kind: input, shape index: {}]   ;;  %s563_s3 = inlined_call_operand.hbm [shape: f32[32,32], index: 3, kind: input, shape index: {}]   ;;  %s564_s4 = inlined_call_operand.hbm [shape: f32[32,32], index: 4, kind: input, shape index: {}]   ;;  %s565_s5 = inlined_call_operand.hbm [shape: f32[32,32], index: 5, kind: input, shape index: {}]   ;;  %s566_s6 = inlined_call_operand.hbm [shape: f32[32,64], index: 6, kind: input, shape index: {}]   ;;  %s567_s7 = inlined_call_operand.vmem [shape: f32[4,64], index: 7, kind: input, shape index: {}]   ;;  %s568_s8 = inlined_call_operand.hbm [shape: f32[2,32], index: 8, kind: output, shape index: {}]  }
   0x1   :  { %15 = vsyncpa [#allocation9], 0 }
   0x2   :  { %16 = vsyncpa [#allocation12], 0 }
   0x3   :  { %17 = vsyncpa [#allocation7], 0  ;;  %s37_s28 = sshll.u32 %s563_s3, 4  ;;  %s465_s29 = smov [#allocation8]   ;;  %s38_s28 = int_to_ptr.hbm [resolvable:$true] %s37_s28 }
   0x4   :  { %s39_s30 = sshll.u32 %s465_s29, 4  ;;  %s63_s11 = sshll.u32 %s565_s5, 4  ;;  %s40_s30 = int_to_ptr.vmem [resolvable:$true] %s39_s30  ;;  %s64_s11 = int_to_ptr.hbm [resolvable:$true] %s63_s11 }
   0x5   :  { %s466_s12 = smov 128   ;;  %s467_s13 = smov 8  }
   0x6   :  { %45 = dma.hbm_to_vmem [thread:$0]  %s38_s28, 512, %s40_s30, [#allocation9], %s466_s12, %s466_s12, %s467_s13  }
   0x7   :  { %s468_s14 = smov [#allocation11]   ;;  %s22_s18 = sshll.u32 %s561_s1, 4  ;;  %s23_s18 = int_to_ptr.hbm [resolvable:$true] %s22_s18 }
   0x8   :  { %s65_s15 = sshll.u32 %s468_s14, 4  ;;  %s50_s20 = sshll.u32 %s564_s4, 4  ;;  %s66_s15 = int_to_ptr.vmem [resolvable:$true] %s65_s15  ;;  %s51_s20 = int_to_ptr.hbm [resolvable:$true] %s50_s20 }
   0x9   :  { %71 = dma.hbm_to_vmem [thread:$0]  %s64_s11, 512, %s66_s15, [#allocation12], %s466_s12, %s466_s12, %s467_s13  }
   0xa   :  { %s469_s21 = smov [#allocation5]   ;;  %s470_s5 = smov [#allocation10]  }
   0xb   :  { %s24_s22 = sshll.u32 %s469_s21, 4  ;;  %s52_s23 = sshll.u32 %s470_s5, 4  ;;  %s25_s22 = int_to_ptr.vmem [resolvable:$true] %s24_s22  ;;  %s53_s23 = int_to_ptr.vmem [resolvable:$true] %s52_s23 }
   0xc   :  { %30 = dma.hbm_to_vmem [thread:$0]  %s23_s18, 256, %s25_s22, [#allocation6], %s466_s12, %s466_s12, %s467_s13  }
   0xd   :  { %s76_s25 = sshll.u32 %s566_s6, 4  ;;  %s471_s1 = smov [#allocation13]   ;;  %s77_s25 = int_to_ptr.hbm [resolvable:$true] %s76_s25 }
   0xe   :  { %58 = dma.hbm_to_vmem [thread:$0]  %s51_s20, 512, %s53_s23, [#allocation9], %s466_s12, %s466_s12, %s467_s13  }
   0xf   :  { %s78_s26 = sshll.u32 %s471_s1, 4  ;;  %s79_s26 = int_to_ptr.vmem [resolvable:$true] %s78_s26 }
  0x10   :  { %84 = dma.hbm_to_vmem [thread:$0]  %s77_s25, 512, %s79_s26, [#allocation12], %s466_s12, %s466_s12, %s467_s13  }
  0x11   :  { %457 = dma.done.wait [#allocation6], 256  }
  0x12   :  { %458 = vsyncadd [#allocation6], 4294967040 }
  0x13   :  { %459 = dma.done.wait [#allocation9], 1024  }
  0x14   :  { %460 = vsyncadd [#allocation9], 4294966272 }
  0x15   :  { %461 = dma.done.wait [#allocation12], 1024  }
  0x16   :  { %462 = vsyncadd [#allocation12], 4294966272  ;;  %v119_v0 = vld [vmem:[#allocation8 + $0x18] sm:$0xff]  ;;  %v118_v1 = vld [vmem:[#allocation8 + $0x10] sm:$0xff]  ;;  %vm121_vm0 = vcmask 261120   ;;  %vm111_vm1 = vcmask 254976  }
  0x17   :  { %140 = vmatpush.msra.mxu0 %v119_v0  ;;  %v117_v2 = vld [vmem:[#allocation8 + $0x8] sm:$0xff]  ;;  %v116_v3 = vld [vmem:[#allocation8] sm:$0xff]  ;;  %v114_v4 = vld [vmem:[#allocation5] sm:$0xff]  ;;  %v472_v6 = vmov 0.0   ;;  %vm170_vm2 = vcmask 1041409   ;;  %s474_s29 = smov [#allocation14]  }
  0x18   :  { %v115_v5 = vld [vmem:[#allocation5 + $0x8] sm:$0xff]  ;;  %112 = vst.msk [vmem:[#allocation2] sm:$0x3] %vm111_vm1, %v472_v6  ;;  %v541_v7 = vld [vmem:[%s567_s7] sm:$0xf]  ;;  %v181_v14 = vld [vmem:[#allocation10] sm:$0xff] }
  0x19   :  { %141 = vmatpush.msra.mxu0 %v118_v1  ;;  %v120_v8 = vperm.slane %v541_v7, 0  ;;  %v184_v9 = vld [vmem:[#allocation10 + $0x18] sm:$0xff]  ;;  %v183_v10 = vld [vmem:[#allocation10 + $0x10] sm:$0xff]  ;;  %v182_v11 = vld [vmem:[#allocation10 + $0x8] sm:$0xff]  ;;  %v185_v43 = vperm.slane %v541_v7, 1  ;;  %v213_v49 = vperm.slane %v541_v7, 2 }
  0x1a   :  { %201 = vmatpush.msra.mxu1 %v184_v9  ;;  %v212_v18 = vld [vmem:[#allocation11 + $0x18] sm:$0xff]  ;;  %v211_v19 = vld [vmem:[#allocation11 + $0x10] sm:$0xff]  ;;  %v210_v40 = vld [vmem:[#allocation11 + $0x8] sm:$0xff]  ;;  %v242_v53 = vperm.slane %v541_v7, 3  ;;  %s473_s7 = smov 96   ;;  %s282_s30 = sshll.u32 %s474_s29, 4  ;;  %s283_s30 = int_to_ptr.vmem [resolvable:$true] %s282_s30 }
  0x1b   :  { %142 = vmatpush.msra.mxu0 %v117_v2  ;;  %229 = vmatpush.msra.mxu2 %v212_v18  ;;  %v209_v41 = vld [vmem:[#allocation11] sm:$0xff]  ;;  %v241_v42 = vld [vmem:[#allocation13 + $0x18] sm:$0xff]  ;;  %v240_v46 = vld [vmem:[#allocation13 + $0x10] sm:$0xff]  ;;  %s284_s11 = sshll.u32 %s568_s8, 4  ;;  %s285_s11 = int_to_ptr.hbm [resolvable:$true] %s284_s11 }
  0x1c   :  { %202 = vmatpush.msra.mxu1 %v183_v10  ;;  %258 = vmatpush.msra.mxu3 %v241_v42  ;;  %v239_v47 = vld [vmem:[#allocation13 + $0x8] sm:$0xff]  ;;  %v238_v48 = vld [vmem:[#allocation13] sm:$0xff] }
  0x1d   :  { %143 = vmatpush.msra.mxu0 %v116_v3  ;;  %230 = vmatpush.msra.mxu2 %v211_v19  ;;  %v269_v59 = vld [vmem:[%s562_s2] sm:$0x3] }
  0x1e   :  { %296 = vmatmul.msk.f32.vlgmr.msra.gmra.mxu0 %vm121_vm0, %v114_v4  ;;  %203 = vmatpush.msra.mxu1 %v182_v11 }
  0x1f   :  { %v153_v34 = vld [vmem:[#allocation2] sm:$0x3]  ;;  %231 = vmatpush.msra.mxu2 %v210_v40  ;;  %259 = vmatpush.msra.mxu3 %v240_v46 }
  0x20   :  { %204 = vmatpush.msra.mxu1 %v181_v14 }
  0x21   :  { %232 = vmatpush.msra.mxu2 %v209_v41  ;;  %260 = vmatpush.msra.mxu3 %v239_v47 }
  0x23   :  { %261 = vmatpush.msra.mxu3 %v238_v48 }
  0x26   :  { %297 = vmatmul.msk.f32.gmra.mxu0 %vm121_vm0, %v115_v5 }
  0x9b   :  { %v145_v12 = vpop.f32.mrf.mxu0 }
  0x9c   :  { %v146_v13 = vadd.f32 %v145_v12, %v120_v8 }
  0x9e   :  { %v151_v15 = vmax.f32 %v146_v13, 0.0 }
  0xa0   :  { %v154_v16 = vsel %vm121_vm0, %v151_v15, 0.0 }
  0xa1   :  { %v155_v17 = vrot.slane %v154_v16, 4 }
  0xa3   :  { %v156_v20 = vadd.f32 %v155_v17, %v154_v16  ;;  %v148_v21 = vpop.f32.mrf.mxu0 }
  0xa4   :  { %v149_v22 = vadd.f32 %v148_v21, %v120_v8 }
  0xa5   :  { %v157_v24 = vrot.slane %v156_v20, 2 }
  0xa6   :  { %v152_v23 = vmax.f32 %v149_v22, 0.0 }
  0xa7   :  { %v158_v27 = vadd.f32 %v157_v24, %v156_v20 }
  0xa8   :  { %v161_v25 = vsel %vm121_vm0, %v152_v23, 0.0 }
  0xa9   :  { %v162_v26 = vrot.slane %v161_v25, 4  ;;  %v159_v30 = vrot.slane %v158_v27, 1 }
  0xab   :  { %v163_v28 = vadd.f32 %v162_v26, %v161_v25  ;;  %v160_v33 = vadd.f32 %v159_v30, %v158_v27 }
  0xad   :  { %v164_v29 = vrot.slane %v163_v28, 2 }
  0xaf   :  { %v165_v31 = vadd.f32 %v164_v29, %v163_v28 }
  0xb1   :  { %v166_v32 = vrot.slane %v165_v31, 1 }
  0xb3   :  { %v167_v35 = vadd.f32 %v166_v32, %v165_v31 }
  0xb5   :  { %v171_v36 = vsel %vm170_vm2, %v167_v35, %v160_v33 }
  0xb6   :  { %v173_v37 = vadd.f32 %v171_v36, %v153_v34 }
  0xb8   :  { %175 = vst.msk [vmem:[#allocation2] sm:$0x3] %vm111_vm1, %v173_v37 }
  0xbf   :  { %v179_v38 = vld [vmem:[#allocation2] sm:$0x3] }
  0xc0   :  { %v180_v39 = vmul.f32 0.125, %v179_v38 }
  0xc2   :  { %298 = vmatmul.msk.f32.vlgmr.msra.gmra.mxu1 %vm121_vm0, %v180_v39 }
 0x13f   :  { %v206_v44 = vpop.f32.mrf.mxu1 }
 0x140   :  { %v207_v45 = vadd.f32 %v206_v44, %v185_v43 }
 0x142   :  { %299 = vmatmul.msk.f32.vlgmr.msra.gmra.mxu2 %vm121_vm0, %v207_v45 }
 0x1c5   :  { %v234_v50 = vpop.f32.mrf.mxu2 }
 0x1c6   :  { %v235_v51 = vadd.f32 %v234_v50, %v213_v49 }
 0x1c8   :  { %v237_v52 = vmax.f32 %v235_v51, 0.0 }
 0x1ca   :  { %300 = vmatmul.msk.f32.vlgmr.msra.gmra.mxu3 %vm121_vm0, %v237_v52 }
 0x24d   :  { %v263_v54 = vpop.f32.mrf.mxu3 }
 0x24e   :  { %v264_v55 = vadd.f32 %v263_v54, %v242_v53 }
 0x250   :  { %v266_v56 = vmul.f32 0.5, %v264_v55 }
 0x252   :  { %v267_v57 = vmul.f32 1.442695, %v266_v56 }
 0x254   :  { %311 = vpow2.f32 %v267_v57 }
 0x25a   :  { %v312_v58 = vpop.eup %311 }
 0x25b   :  { %271 = vrot.lane.b32.xlu0 %v312_v58, %s473_s7 }
 0x2cd   :  { %v272_v60 = vpop.permute.xlu0 %271 }
 0x2ce   :  { %v274_v61 = vmul.f32 %v272_v60, %v269_v59 }
 0x2d0   :  { %v275_v62 = vadd.f32 %v274_v61, %v264_v55 }
 0x2d2   :  { %276 = vst.msk [vmem:[#allocation14] sm:$0x3] %vm111_vm1, %v275_v62 }
 0x2d3   :  { %287 = dma.vmem_to_hbm [thread:$0]  %s283_s30, 32, %s285_s11, [#allocation7]  }
 0x2d4   :  { %463 = dma.done.wait [#allocation7], 32  }
 0x2d5   :  { %464 = vsyncadd [#allocation7], 4294967264 }
 0x2d6   :  { %292 = vsyncpa [#allocation6], 1 }
 0x2d7   :  { %293 = vsyncpa [#allocation9], 1 }
 0x2d8   :  { %294 = vsyncpa [#allocation12], 1 }
 0x2d9   :  { %295 = vsyncpa [#allocation7], 1 }

</bundles_post_ra>
